<compile_context>
chip_gen: v6e
topology: v6e:2x2x1
jax: 0.10.0
libtpu: 0.0.40
codegen_flags: <defaults>
</compile_context>

<pallas_src>
import functools

import jax
import jax.numpy as jnp
from jax import lax
from jax.experimental import pallas as pl
from jax.experimental.pallas import tpu as pltpu

_LANE = 128


def _cdiv(a, b):
    return -(-a // b)


def _round_up(x, m):
    return _cdiv(x, m) * m


def _rope_kernel(*refs, mode, row_scale):
    """Writes one (block_rows, width) tile of the cos and sin tables.

    mode:
      "packed"  : width == 128; each output row packs `row_scale` consecutive
                  positions; angle = ((row0 + i) * row_scale + off[j]) * freq[j].
      "half128" : dim == 128; the compute tile packs the unique 64-wide halves
                  of output rows i and i + block//2, expanded afterwards with a
                  lane roll (XLU) + select.
      "dup"     : dim % 256 == 0; compute dim//2 lanes, store into both halves.
      "plain"   : direct full-width computation.
    """
    if mode in ("packed", "half128"):
        freq_ref, off_ref, cos_ref, sin_ref = refs
    else:
        freq_ref, cos_ref, sin_ref = refs

    out_rows = cos_ref.shape[0]
    n = out_rows // 2 if mode == "half128" else out_rows
    row0 = pl.program_id(0) * out_rows

    # (n, 1) column of absolute row indices; lane broadcast rides the multiply.
    r = (row0 + lax.broadcasted_iota(jnp.int32, (n, 1), 0)).astype(jnp.float32)
    if row_scale != 1:
        r = r * float(row_scale)
    if mode in ("packed", "half128"):
        # t is exactly integer-valued in f32, so emb = t * freq is a single
        # rounding, matching the reference outer product.
        t = r + off_ref[...]
    else:
        t = r
    emb = t * freq_ref[...]
    c = jnp.cos(emb)
    s = jnp.sin(emb)

    if mode == "dup":
        h = cos_ref.shape[1] // 2
        cd = c.astype(cos_ref.dtype)
        sd = s.astype(sin_ref.dtype)
        cos_ref[:, :h] = cd
        cos_ref[:, h:] = cd
        sin_ref[:, :h] = sd
        sin_ref[:, h:] = sd
    elif mode == "half128":
        half = cos_ref.shape[1] // 2  # == 64
        lane = lax.broadcasted_iota(jnp.int32, c.shape, 1)
        first = lane < half
        c_roll = pltpu.roll(c, shift=half, axis=1)  # swap lane halves (XLU slot)
        s_roll = pltpu.roll(s, shift=half, axis=1)
        cos_ref[:n, :] = jnp.where(first, c, c_roll).astype(cos_ref.dtype)
        cos_ref[n:, :] = jnp.where(first, c_roll, c).astype(cos_ref.dtype)
        sin_ref[:n, :] = jnp.where(first, s, s_roll).astype(sin_ref.dtype)
        sin_ref[n:, :] = jnp.where(first, s_roll, s).astype(sin_ref.dtype)
    else:
        cos_ref[...] = c.astype(cos_ref.dtype)
        sin_ref[...] = s.astype(sin_ref.dtype)


def _pick_tiling(rows, width, sublane):
    """Pick block_rows: <= ~2 MiB of f32 per output block, a multiple of
    `sublane`, and (when rows allow) an even grid of >= 4 steps so both v7x
    TensorCores get >= 2 balanced blocks.  grid = cdiv(rows, block_rows); the
    partial last block is clipped by the pipeline (no padded output rows)."""
    cap = max(sublane, min(4096, (2 << 20) // (width * 4)) // sublane * sublane)
    steps = max(4, _cdiv(rows, cap))
    steps += steps & 1  # even step count
    blk = min(_round_up(_cdiv(rows, steps), sublane), cap)
    if blk >= rows:
        return rows  # single full-array block (always a legal block shape)
    return blk


def rotary_embedding(seq_len, dim, base=10000.0, out_dtype=jnp.float32):
    """Returns (cos, sin), each `out_dtype` of shape (seq_len, dim)."""
    assert dim % 2 == 0 and seq_len >= 1
    assert seq_len < (1 << 24), "row index is carried exactly in f32"
    half = dim // 2
    out_dtype = jnp.dtype(out_dtype)
    sublane = max(8, 32 // max(1, out_dtype.itemsize))  # 8 f32 / 16 bf16 / 32 i8

    # Buffer setup (matches nn.Module __init__), done in plain JAX glue.
    inv_freq = 1.0 / (base ** (jnp.arange(0, dim, 2, dtype=jnp.float32) / dim))
    inv_freq_cat = jnp.concatenate([inv_freq, inv_freq], axis=0)  # (dim,)

    if dim < _LANE and _LANE % dim == 0:
        mode, rep, width = "packed", _LANE // dim, _LANE
        rows = _cdiv(seq_len, rep)
    elif dim % (2 * _LANE) == 0:
        mode, rep, width = "dup", 1, dim
        rows = seq_len
    elif dim == _LANE:
        mode, rep, width = "half128", 1, dim
        rows = seq_len
    else:
        # TODO(synk): lane-pack lcm(dim,128)//dim rows for dims like 96/160/192
        # so stores stay 128-lane dense; those fall back to plain stores here.
        mode, rep, width = "plain", 1, dim
        rows = seq_len

    block_rows = _pick_tiling(rows, width, 16 if mode == "half128" else sublane)
    if mode == "half128" and block_rows % 2:
        mode = "plain"  # odd single-block corner case (tiny tables only)

    if mode == "packed":
        row_scale = rep
        freq_row = jnp.tile(inv_freq_cat, rep).reshape(1, _LANE)
        off_row = (jnp.arange(_LANE, dtype=jnp.int32) // dim).astype(
            jnp.float32).reshape(1, _LANE)
        args = (freq_row, off_row)
    elif mode == "half128":
        row_scale = 1
        freq_row = inv_freq_cat.reshape(1, _LANE)
        off_row = jnp.where(jnp.arange(_LANE) < half, 0.0,
                            float(block_rows // 2)).astype(
                                jnp.float32).reshape(1, _LANE)
        args = (freq_row, off_row)
    elif mode == "dup":
        row_scale = 1
        freq_row = inv_freq.reshape(1, half)
        args = (freq_row,)
    else:
        row_scale = 1
        freq_row = inv_freq_cat.reshape(1, dim)
        args = (freq_row,)

    grid = (_cdiv(rows, block_rows),)
    param_w = freq_row.shape[1]
    in_specs = [pl.BlockSpec((1, param_w), lambda i: (0, 0)) for _ in args]

    kernel = functools.partial(_rope_kernel, mode=mode, row_scale=row_scale)
    cos, sin = pl.pallas_call(
        kernel,
        out_shape=(jax.ShapeDtypeStruct((rows, width), out_dtype),
                   jax.ShapeDtypeStruct((rows, width), out_dtype)),
        grid=grid,
        in_specs=in_specs,
        out_specs=(pl.BlockSpec((block_rows, width), lambda i: (i, 0)),
                   pl.BlockSpec((block_rows, width), lambda i: (i, 0))),
        compiler_params=pltpu.CompilerParams(
            dimension_semantics=("parallel",),
            vmem_limit_bytes=40 << 20,
        ),
    )(*args)

    if mode == "packed":
        # Row-major reinterpretation back to (seq, dim); no data shuffle.
        cos = cos.reshape(rows * rep, dim)
        sin = sin.reshape(rows * rep, dim)
        if rows * rep != seq_len:  # at most rep-1 (<= 3) extra rows trimmed
            cos = cos[:seq_len]
            sin = sin[:seq_len]
    return cos, sin


def _reference(seq_len, dim, base=10000.0):
    inv_freq = 1.0 / (base ** (jnp.arange(0, dim, 2, dtype=jnp.float32) / dim))
    t = jnp.arange(seq_len, dtype=jnp.float32)
    freqs = jnp.einsum("i,j->ij", t, inv_freq)
    emb = jnp.concatenate([freqs, freqs], axis=-1)
    return jnp.cos(emb), jnp.sin(emb)


if __name__ == "__main__":
    # Op is deterministic; PRNGKey kept for convention.
    _ = jax.random.PRNGKey(0)

    # Main case consistent with the module's forward: seq=8, head dim=32.
    seq_len, dim = 8, 32
    cos, sin = rotary_embedding(seq_len, dim)
    jax.block_until_ready((cos, sin))
    cos_ref, sin_ref = _reference(seq_len, dim)
    assert cos.shape == (seq_len, dim) and sin.shape == (seq_len, dim)
    assert cos.dtype == jnp.float32 and sin.dtype == jnp.float32
    assert jnp.allclose(cos, cos_ref, atol=1e-5, rtol=1e-5)
    assert jnp.allclose(sin, sin_ref, atol=1e-5, rtol=1e-5)

    # Exercise every code path at small sizes:
    #   (16, 128) half-trig lane-packed path, (12, 256) duplicated-half path
    #   with a clipped last block, (9, 64) packed path with a trailing partial
    #   group, (8, 192) plain fallback.
    for s, d in ((16, 128), (12, 256), (9, 64), (8, 192)):
        c, sn = rotary_embedding(s, d)
        jax.block_until_ready((c, sn))
        cr, sr = _reference(s, d)
        assert c.shape == (s, d) and sn.shape == (s, d), (s, d)
        assert jnp.allclose(c, cr, atol=1e-5, rtol=1e-5), (s, d)
        assert jnp.allclose(sn, sr, atol=1e-5, rtol=1e-5), (s, d)

    print("KERNEL_OK")
</pallas_src>

<mosaic_0001>
module attributes {stable_mosaic.version = 11 : i64} {
  func.func @_rope_kernel(%arg0: i32, %arg1: memref<1x128xf32, #tpu.memory_space<vmem>>, %arg2: memref<1x128xf32, #tpu.memory_space<vmem>>, %arg3: memref<2x128xf32, #tpu.memory_space<vmem>>, %arg4: memref<2x128xf32, #tpu.memory_space<vmem>>) attributes {dimension_semantics = [#tpu.dimension_semantics<parallel>], iteration_bounds = array<i64: 1>, scalar_prefetch = 0 : i64, scratch_operands = 0 : i64, tpu.core_type = #tpu.core_type<tc>, window_params = [{pipeline_mode = #tpu.pipeline_mode<synchronous>, transform_indices = @transform_0, window_bounds = array<i64: 1, 128>}, {pipeline_mode = #tpu.pipeline_mode<synchronous>, transform_indices = @transform_1, window_bounds = array<i64: 1, 128>}, {transform_indices = @transform_2, window_bounds = array<i64: 2, 128>}, {transform_indices = @transform_3, window_bounds = array<i64: 2, 128>}]} {
    %c2_i32 = arith.constant 2 : i32
    %0 = arith.muli %arg0, %c2_i32 : i32
    %1 = tpu.iota {dimensions = array<i32: 0>} : vector<2x1xi32>
    %2 = vector.broadcast %0 : i32 to vector<2x1xi32>
    %3 = arith.addi %2, %1 : vector<2x1xi32>
    %4 = arith.sitofp %3 : vector<2x1xi32> to vector<2x1xf32>
    %cst = arith.constant 4.000000e+00 : f32
    %5 = vector.broadcast %cst : f32 to vector<2x1xf32>
    %6 = arith.mulf %4, %5 : vector<2x1xf32>
    %c0 = arith.constant 0 : index
    %c0_0 = arith.constant 0 : index
    %7 = vector.load %arg2[%c0, %c0_0] : memref<1x128xf32, #tpu.memory_space<vmem>>, vector<1x128xf32>
    %8 = vector.broadcast %6 : vector<2x1xf32> to vector<2x128xf32>
    %9 = vector.broadcast %7 : vector<1x128xf32> to vector<2x128xf32>
    %10 = arith.addf %8, %9 : vector<2x128xf32>
    %c0_1 = arith.constant 0 : index
    %c0_2 = arith.constant 0 : index
    %11 = vector.load %arg1[%c0_1, %c0_2] : memref<1x128xf32, #tpu.memory_space<vmem>>, vector<1x128xf32>
    %12 = vector.broadcast %11 : vector<1x128xf32> to vector<2x128xf32>
    %13 = arith.mulf %10, %12 : vector<2x128xf32>
    %14 = math.cos %13 : vector<2x128xf32>
    %15 = math.sin %13 : vector<2x128xf32>
    %c0_3 = arith.constant 0 : index
    %c0_4 = arith.constant 0 : index
    %16 = vector.load %arg3[%c0_3, %c0_4] : memref<2x128xf32, #tpu.memory_space<vmem>>, vector<2x128xf32>
    tpu.vector_store %arg3[%c0_3, %c0_4], %14 {strides = array<i32>} : memref<2x128xf32, #tpu.memory_space<vmem>>, vector<2x128xf32>,
    %c0_5 = arith.constant 0 : index
    %c0_6 = arith.constant 0 : index
    %17 = vector.load %arg4[%c0_5, %c0_6] : memref<2x128xf32, #tpu.memory_space<vmem>>, vector<2x128xf32>
    tpu.vector_store %arg4[%c0_5, %c0_6], %15 {strides = array<i32>} : memref<2x128xf32, #tpu.memory_space<vmem>>, vector<2x128xf32>,
    return
  }
  func.func @transform_0(%arg0: i32) -> (i32, i32) {
    %c0_i32 = arith.constant 0 : i32
    %c0_i32_0 = arith.constant 0 : i32
    %c0_i32_1 = arith.constant 0 : i32
    return %c0_i32, %c0_i32_0 : i32, i32
  }
  func.func @transform_1(%arg0: i32) -> (i32, i32) {
    %c0_i32 = arith.constant 0 : i32
    %c0_i32_0 = arith.constant 0 : i32
    %c0_i32_1 = arith.constant 0 : i32
    return %c0_i32, %c0_i32_0 : i32, i32
  }
  func.func @transform_2(%arg0: i32) -> (i32, i32) {
    %c0_i32 = arith.constant 0 : i32
    %c0_i32_0 = arith.constant 0 : i32
    return %arg0, %c0_i32 : i32, i32
  }
  func.func @transform_3(%arg0: i32) -> (i32, i32) {
    %c0_i32 = arith.constant 0 : i32
    %c0_i32_0 = arith.constant 0 : i32
    return %arg0, %c0_i32 : i32, i32
  }
}

</mosaic_0001>

<bundles_post_ra>
// kernel: tpu_custom_call.1
= control target key start
LH: loop header
LB: loop body
LE: loop exit
PB: predicated region body
PF: predicated region fallthrough
CT: control target
= control target key end

     0   :  { %9 = vsyncpa [#allocation3], 0  ;;  %s443_s0 = inlined_call_operand.hbm [shape: f32[1,128], index: 0, kind: input, shape index: {}]   ;;  %s444_s1 = inlined_call_operand.vmem [shape: f32[1,128], index: 1, kind: input, shape index: {}]   ;;  %s445_s2 = inlined_call_operand.hbm [shape: f32[2,128], index: 2, kind: output, shape index: {0}]   ;;  %s446_s3 = inlined_call_operand.hbm [shape: f32[2,128], index: 3, kind: output, shape index: {1}]  }
   0x1   :  { %10 = vsyncpa [#allocation4], 0 }
   0x2   :  { %11 = vsyncpa [#allocation7], 0  ;;  %s381_s12 = smov [#allocation2]  }
   0x3   :  { %s18_s13 = sshll.u32 %s381_s12, 4  ;;  %s19_s13 = int_to_ptr.vmem [resolvable:$true] %s18_s13 }
   0x4   :  { %s323_s14 = scalar_lea.vmem %s19_s13, 16  ;;  %s327_s15 = scalar_lea.vmem %s19_s13, 32 }
   0x5   :  { %p324_p0 = scmp.ne.s32.totalorder %s19_s13, %s323_s14  ;;  %p328_p1 = scmp.lt.s32.totalorder %s19_s13, %s19_s13 }
   0x6   :  { %p329_p2 = scmp.lt.s32.totalorder %s327_s15, %s323_s14 }
   0x8   :  { %p330_p3 = por %p329_p2, %p328_p1 }
   0xa   :  { %p331_p4 = pnand %p330_p3, %p324_p0 }
   0xc   :  { %334 = shalt.err (!%p331_p4)
}
   0xd   :  { %21 = dma.hbm_to_vmem [thread:$0]  %s443_s0, 16, %s19_s13, [#allocation3]  }
   0xe   :  { %375 = dma.done.wait [#allocation3], 16  }
   0xf   :  { %376 = vsyncadd [#allocation3], 4294967280  ;;  %v28_v0 = vlaneseq  ;;  %v288_v4 = vld [vmem:[%s444_s1] ss:$0 sm:$0xff]  ;;  %v382_v19 = vmov 683565275  }
  0x10   :  { %v289_v5 = vld [vmem:[#allocation2] ss:$0 sm:$0xff]  ;;  %v383_v21 = vmov 2475754826   ;;  %v384_v23 = vmov 2131351028  }
  0x11   :  { %v29_v1 = vshrl.u32 %v28_v0, 7  ;;  %v385_v25 = vmov 2102212464   ;;  %v386_v27 = vmov 920167782   ;;  %s388_s0 = smov [#allocation5]  }
  0x12   :  { %v387_v34 = vmov 1326507024   ;;  %s265_s1 = sshll.u32 %s388_s0, 4  ;;  %s389_s20 = smov [#allocation6]   ;;  %s266_s1 = int_to_ptr.vmem [resolvable:$true] %s265_s1 }
  0x13   :  { %v32_v2 = vcvt.s32.f32 %v29_v1  ;;  %s275_s21 = sshll.u32 %s389_s20, 4  ;;  %s335_s22 = scalar_lea.vmem %s266_s1, 32  ;;  %s276_s21 = int_to_ptr.vmem [resolvable:$true] %s275_s21 }
  0x14   :  { %p336_p5 = scmp.ne.s32.totalorder %s266_s1, %s335_s22  ;;  %p340_p6 = scmp.lt.s32.totalorder %s266_s1, %s266_s1 }
  0x15   :  { %v33_v3 = vmul.f32 4.0, %v32_v2  ;;  %p341_p7 = scmp.lt.s32.totalorder %s335_s22, %s335_s22 }
  0x17   :  { %v41_v6 = vadd.f32 %v288_v4, %v33_v3  ;;  %p342_p8 = por %p341_p7, %p340_p6 }
  0x19   :  { %v416_v7 = vmul.f32 %v289_v5, %v41_v6  ;;  %p343_p9 = pnand %p342_p8, %p336_p5 }
  0x1b   :  { %v53_v8 = vand.u32 2139095040, %v416_v7  ;;  %v50_v10 = vand.u32 2147483647, %v416_v7  ;;  %vm52_vm7 = vcmp.lt.s32.totalorder %v416_v7, 0  ;;  %vm142_vm15 = vweird.f32 %v416_v7 }
  0x1d   :  { %v54_v9 = vshrl.u32 %v53_v8, 23  ;;  %v57_v13 = vand.u32 8388607, %v50_v10  ;;  %vm51_vm8 = vcmp.le.f32.partialorder %v50_v10, 0.7853982 }
  0x1f   :  { %v290_v11 = vadd.s32 4294967169, %v54_v9  ;;  %v58_v16 = vor.u32 8388608, %v57_v13 }
  0x21   :  { %v60_v12 = vadd.s32 1, %v290_v11  ;;  %v98_v36 = vshll.u32 %v58_v16, 8 }
  0x23   :  { %vm61_vm0 = vcmp.gt.s32.totalorder %v60_v12, 0 }
  0x24   :  { %v62_v14 = vsel %vm61_vm0, %v60_v12, 0 }
  0x25   :  { %v64_v15 = vand.u32 31, %v62_v14  ;;  %v63_v17 = vshrl.u32 %v62_v14, 5 }
  0x27   :  { %v65_v18 = vsub.s32 32, %v64_v15  ;;  %v67_v20 = vshll.u32 %v382_v19, %v64_v15  ;;  %v70_v22 = vshll.u32 %v383_v21, %v64_v15  ;;  %v73_v24 = vshll.u32 %v384_v23, %v64_v15 }
  0x28   :  { %v76_v26 = vshll.u32 %v385_v25, %v64_v15  ;;  %v79_v28 = vshll.u32 %v386_v27, %v64_v15  ;;  %vm82_vm1 = vcmp.lt.s32.totalorder %v63_v17, 1  ;;  %vm85_vm2 = vcmp.lt.s32.totalorder %v63_v17, 4 }
  0x29   :  { %v66_v29 = vshrl.u32 %v382_v19, %v65_v18  ;;  %v68_v30 = vshrl.u32 %v383_v21, %v65_v18  ;;  %v71_v31 = vshrl.u32 %v384_v23, %v65_v18  ;;  %v74_v32 = vshrl.u32 %v385_v25, %v65_v18 }
  0x2a   :  { %v77_v33 = vshrl.u32 %v386_v27, %v65_v18  ;;  %v80_v35 = vshrl.u32 %v387_v34, %v65_v18  ;;  %vm83_vm3 = vcmp.lt.s32.totalorder %v63_v17, 2  ;;  %vm84_vm4 = vcmp.lt.s32.totalorder %v63_v17, 3 }
  0x2b   :  { %v69_v37 = vor.u32 %v68_v30, %v67_v20  ;;  %v72_v38 = vor.u32 %v71_v31, %v70_v22  ;;  %v75_v39 = vor.u32 %v74_v32, %v73_v24 }
  0x2c   :  { %v78_v40 = vor.u32 %v77_v33, %v76_v26  ;;  %v81_v41 = vor.u32 %v80_v35, %v79_v28 }
  0x2d   :  { %v86_v42 = vsel %vm82_vm1, %v66_v29, %v69_v37  ;;  %v87_v43 = vsel %vm85_vm2, %v75_v39, 2102212464  ;;  %v90_v44 = vsel %vm82_vm1, %v69_v37, %v72_v38  ;;  %v94_v45 = vsel %vm82_vm1, %v72_v38, %v75_v39 }
  0x2e   :  { %v88_v46 = vsel %vm84_vm4, %v72_v38, %v87_v43  ;;  %v91_v47 = vsel %vm85_vm2, %v78_v40, 920167782  ;;  %v95_v48 = vsel %vm85_vm2, %v81_v41, 1326507024 }
  0x2f   :  { %v92_v49 = vsel %vm84_vm4, %v75_v39, %v91_v47  ;;  %v96_v50 = vsel %vm84_vm4, %v78_v40, %v95_v48  ;;  %v89_v51 = vsel %vm83_vm3, %v86_v42, %v88_v46 }
  0x30   :  { %v93_v52 = vsel %vm83_vm3, %v90_v44, %v92_v49  ;;  %v97_v53 = vsel %vm83_vm3, %v94_v45, %v96_v50  ;;  %v105_v58 = vmul.u32 %v98_v36, %v89_v51 }
  0x31   :  { %v422_v54 = vmul.u32.u64.low %v98_v36, %v97_v53  ;;  %v423_v55 = vmul.u32.u64.high %v98_v36, %v97_v53, %v422_v54  ;;  %v425_v56 = vmul.u32.u64.low %v98_v36, %v93_v52  ;;  %v426_v57 = vmul.u32.u64.high %v98_v36, %v93_v52, %v425_v56 }
  0x33   :  { %vm107_vm5 = vc.u32 %v423_v55, %v425_v56  ;;  %v108_v59 = vadd.s32 1, %v426_v57  ;;  %v106_v6 = vadd.s32 %v425_v56, %v423_v55 }
  0x35   :  { %v109_v60 = vsel %vm107_vm5, %v108_v59, %v426_v57 }
  0x36   :  { %v110_v61 = vadd.s32 %v109_v60, %v105_v58 }
  0x38   :  { %v111_v62 = vadd.s32 536870912, %v110_v61 }
  0x3a   :  { %v112_v63 = vshrl.u32 %v111_v62, 30 }
  0x3c   :  { %v113_v0 = vshll.u32 %v112_v63, 30  ;;  %v136_v21 = vsub.s32 4, %v112_v63 }
  0x3e   :  { %v114_v1 = vsub.s32 %v110_v61, %v113_v0  ;;  %v137_v24 = vsel %vm52_vm7, %v136_v21, %v112_v63 }
  0x3f   :  { %v139_v26 = vsel %vm51_vm8, 0, %v137_v24 }
  0x40   :  { %v116_v2 = vsub.s32 0, %v114_v1  ;;  %v246_v27 = vadd.s32 3, %v139_v26  ;;  %v143_v28 = vand.u32 3, %v139_v26 }
  0x42   :  { %v291_v3 = vmin.u32 %v116_v2, %v114_v1  ;;  %v247_v29 = vand.u32 3, %v246_v27  ;;  %vm148_vm9 = vcmp.eq.s32.totalorder %v143_v28, 2  ;;  %vm145_vm11 = vcmp.eq.s32.totalorder %v143_v28, 0 }
  0x43   :  { %vm144_vm13 = vcmp.lt.s32.totalorder %v143_v28, 2 }
  0x44   :  { %v118_v4 = vclz %v291_v3  ;;  %vm252_vm10 = vcmp.eq.s32.totalorder %v247_v29, 2  ;;  %vm249_vm12 = vcmp.eq.s32.totalorder %v247_v29, 0  ;;  %vm248_vm14 = vcmp.lt.s32.totalorder %v247_v29, 2 }
  0x46   :  { %v292_v5 = vadd.s32 4294967294, %v118_v4 }
  0x48   :  { %vm293_vm6 = vcmp.lt.s32.totalorder %v292_v5, 0 }
  0x49   :  { %v121_v8 = vsel %vm293_vm6, 0, %v292_v5 }
  0x4a   :  { %v122_v9 = vsub.s32 32, %v121_v8  ;;  %v123_v11 = vshll.u32 %v114_v1, %v121_v8  ;;  %v126_v12 = vsub.s32 4294967266, %v121_v8 }
  0x4c   :  { %v124_v13 = vshrl.u32 %v106_v6, %v122_v9  ;;  %v127_v14 = vadd.s32 127, %v126_v12 }
  0x4e   :  { %v125_v15 = vor.u32 %v124_v13, %v123_v11  ;;  %v128_v16 = vshll.u32 %v127_v14, 23 }
  0x50   :  { %v129_v17 = vor.u32 4788187, %v128_v16  ;;  %v132_v18 = vcvt.s32.f32 %v125_v15 }
  0x52   :  { %v130_v19 = vand.u32 2147483647, %v129_v17 }
  0x54   :  { %v133_v20 = vmul.f32 %v132_v18, %v130_v19 }
  0x56   :  { %v134_v22 = vxor.u32 2147483648, %v133_v20 }
  0x58   :  { %v135_v23 = vsel %vm52_vm7, %v134_v22, %v133_v20 }
  0x59   :  { %v138_v25 = vsel %vm51_vm8, %v416_v7, %v135_v23 }
  0x5a   :  { %311 = vcosq.f32 %v138_v25 }
  0x5b   :  { %313 = vsinq.f32 %v138_v25 }
  0x67   :  { %v312_v30 = vpop.eup %311 }
  0x68   :  { %v314_v31 = vpop.eup %313  ;;  %v149_v32 = vxor.u32 2147483648, %v312_v30 }
  0x69   :  { %v146_v10 = vxor.u32 2147483648, %v314_v31 }
  0x6a   :  { %v150_v33 = vsel %vm148_vm9, %v149_v32, %v314_v31  ;;  %v254_v34 = vsel %vm252_vm10, %v149_v32, %v314_v31 }
  0x6b   :  { %v147_v35 = vsel %vm145_vm11, %v312_v30, %v146_v10  ;;  %v251_v36 = vsel %vm249_vm12, %v312_v30, %v146_v10 }
  0x6c   :  { %v151_v37 = vsel %vm144_vm13, %v147_v35, %v150_v33  ;;  %v255_v38 = vsel %vm248_vm14, %v251_v36, %v254_v34 }
  0x6d   :  { %v152_v39 = vsel %vm142_vm15, nan, %v151_v37  ;;  %v256_v40 = vsel %vm142_vm15, nan, %v255_v38 }
  0x6e   :  { %257 = vst [vmem:[#allocation5] sm:$0x3] %v152_v39  ;;  %258 = vst [vmem:[#allocation6] sm:$0x3] %v256_v40 }
  0x6f   :  { %346 = shalt.err (!%p343_p9)
}
  0x70   :  { %268 = dma.vmem_to_hbm [thread:$0]  %s266_s1, 32, %s445_s2, [#allocation4]  }
  0x71   :  { %s355_s25 = scalar_lea.vmem %s276_s21, 32  ;;  %p360_p11 = scmp.lt.s32.totalorder %s276_s21, %s276_s21 }
  0x72   :  { %p356_p10 = scmp.ne.s32.totalorder %s276_s21, %s355_s25  ;;  %p361_p12 = scmp.lt.s32.totalorder %s355_s25, %s355_s25 }
  0x74   :  { %p362_p13 = por %p361_p12, %p360_p11 }
  0x76   :  { %p363_p0 = pnand %p362_p13, %p356_p10 }
  0x78   :  { %366 = shalt.err (!%p363_p0)
}
  0x79   :  { %278 = dma.vmem_to_hbm [thread:$0]  %s276_s21, 32, %s446_s3, [#allocation7]  }
  0x7a   :  { %377 = dma.done.wait [#allocation4], 32  }
  0x7b   :  { %378 = vsyncadd [#allocation4], 4294967264 }
  0x7c   :  { %379 = dma.done.wait [#allocation7], 32  }
  0x7d   :  { %380 = vsyncadd [#allocation7], 4294967264 }
  0x7e   :  { %285 = vsyncpa [#allocation3], 1 }
  0x7f   :  { %286 = vsyncpa [#allocation4], 1 }
  0x80   :  { %287 = vsyncpa [#allocation7], 1 }

</bundles_post_ra>
